<compile_context>
chip_gen: v7x
topology: tpu7x:2x2x1
jax: 0.10.0
libtpu: 0.0.40
codegen_flags: <defaults>
</compile_context>

<pallas_src>
import jax
import jax.numpy as jnp
from jax.experimental import pallas as pl
from jax.experimental.pallas import tpu as pltpu

_LANE = 128
_SUBLANE = 8
_VMEM_LIMIT_BYTES = 32 * 1024 * 1024   # explicit: above v5e's 16 MiB default scoped limit
_VMEM_TILE_BUDGET = 24 * 1024 * 1024   # budget for double-buffered tiles + resident weight


def _round_up(x, m):
    return ((x + m - 1) // m) * m


def linear_kernel(x_ref, w_ref, b_ref, o_ref):
    # x: (tb, pert_dim) input dtype, w: (pert_dim, emb_pad) compute dtype (bf16),
    # b: (1, emb_pad) f32, o: (tb, emb_pad) out dtype.
    x = x_ref[...].astype(w_ref.dtype)          # cast in VMEM (VPU); no extra HBM pass
    acc = jnp.dot(x, w_ref[...], preferred_element_type=jnp.float32)
    o_ref[...] = (acc + b_ref[...]).astype(o_ref.dtype)


def prepare_params(weight, bias, *, compute_dtype=jnp.bfloat16):
    """One-time prep of the nn.Linear params: transpose, pad emb axis to 128, cast.

    weight: (emb_dim, pert_dim)  -- PyTorch nn.Linear layout
    bias:   (emb_dim,)
    returns (w_packed (pert_dim, emb_pad), b_packed (1, emb_pad) f32, emb_dim)
    """
    emb_dim, pert_dim = weight.shape
    emb_pad = _round_up(emb_dim, _LANE)
    w = weight.T.astype(compute_dtype)                       # (pert_dim, emb_dim)
    b = bias.astype(jnp.float32)
    if emb_pad != emb_dim:
        w = jnp.zeros((pert_dim, emb_pad), compute_dtype).at[:, :emb_dim].set(w)
        b = jnp.zeros((emb_pad,), jnp.float32).at[:emb_dim].set(b)
    return w, b.reshape(1, emb_pad), emb_dim


def _choose_batch_tile(B, pert_dim, emb_pad, x_bytes, w_bytes, out_bytes, batch_tile):
    # Pallas still double-buffers the constant-index weight/bias; account for it.
    resident = 2 * (pert_dim * emb_pad * w_bytes + emb_pad * 4)
    per_row = 2 * (pert_dim * x_bytes + emb_pad * out_bytes)   # double-buffered x + out
    tb_cap = (_VMEM_TILE_BUDGET - resident) // max(per_row, 1)
    tb_cap = max(_SUBLANE, (tb_cap // _SUBLANE) * _SUBLANE)
    tb = max(_SUBLANE, min(batch_tile, tb_cap, _round_up(B, _SUBLANE)))
    # v7x megacore: give the "parallel" batch axis >= 2 grid steps when the batch allows.
    if B >= 2 * _SUBLANE and pl.cdiv(B, tb) < 2:
        tb = _round_up(pl.cdiv(B, 2), _SUBLANE)
    return tb


def perturbation_embedding(pert, w_packed, b_packed, emb_dim, *,
                           batch_tile=512, out_dtype=None, return_padded=False):
    """Forward of PerturbationEmbedding.

    pert:     (B, pert_dim)
    w_packed: (pert_dim, emb_pad)  from prepare_params (bf16 by default)
    b_packed: (1, emb_pad) float32 from prepare_params
    returns   (B, emb_dim)   (or (B, emb_pad) when return_padded=True)
    """
    B, pert_dim = pert.shape
    k, emb_pad = w_packed.shape
    assert k == pert_dim, "weight/activation feature-dim mismatch"
    out_dtype = pert.dtype if out_dtype is None else out_dtype
    out_bytes = jnp.dtype(out_dtype).itemsize

    tb = _choose_batch_tile(B, pert_dim, emb_pad,
                            pert.dtype.itemsize, w_packed.dtype.itemsize,
                            out_bytes, batch_tile)
    grid = (pl.cdiv(B, tb),)

    flops = 2 * B * pert_dim * emb_pad
    bytes_accessed = (B * pert_dim * pert.dtype.itemsize
                      + pert_dim * emb_pad * w_packed.dtype.itemsize
                      + emb_pad * 4
                      + B * emb_pad * out_bytes)

    out = pl.pallas_call(
        linear_kernel,
        out_shape=jax.ShapeDtypeStruct((B, emb_pad), out_dtype),
        grid_spec=pl.GridSpec(
            grid=grid,
            in_specs=[
                pl.BlockSpec((tb, pert_dim), lambda i: (i, 0)),
                # Constant index_map -> weight/bias stay VMEM-resident across grid steps.
                pl.BlockSpec((pert_dim, emb_pad), lambda i: (0, 0)),
                pl.BlockSpec((1, emb_pad), lambda i: (0, 0)),
            ],
            out_specs=pl.BlockSpec((tb, emb_pad), lambda i: (i, 0)),
        ),
        compiler_params=pltpu.CompilerParams(
            dimension_semantics=("parallel",),   # rows independent -> megacore-shardable
            vmem_limit_bytes=_VMEM_LIMIT_BYTES,
        ),
        cost_estimate=pl.CostEstimate(
            flops=flops, transcendentals=0, bytes_accessed=bytes_accessed
        ),
    )(pert, w_packed, b_packed)

    if return_padded or emb_pad == emb_dim:
        return out
    return out[:, :emb_dim]


def reference(pert, weight, bias):
    return pert @ weight.T + bias


if __name__ == "__main__":
    # Small shapes consistent with the module: pert_dim=32, emb_dim=64, batch=8.
    batch, pert_dim, emb_dim = 8, 32, 64

    key = jax.random.PRNGKey(0)
    k_x, k_w, k_b = jax.random.split(key, 3)

    pert = jax.random.normal(k_x, (batch, pert_dim), dtype=jnp.float32)
    # PyTorch nn.Linear parameter layout: weight [emb_dim, pert_dim], bias [emb_dim].
    weight = jax.random.normal(k_w, (emb_dim, pert_dim), dtype=jnp.float32) * 0.05
    bias = jax.random.normal(k_b, (emb_dim,), dtype=jnp.float32) * 0.05

    ref = reference(pert, weight, bias)

    # Default (performance) path: bf16 weight / bf16 MXU inputs, f32 accumulate + f32 bias add.
    w_bf16, b_pack, e_dim = prepare_params(weight, bias)            # one-time param prep
    out = perturbation_embedding(pert, w_bf16, b_pack, e_dim)
    out = jax.block_until_ready(out)
    assert out.shape == (batch, emb_dim)
    assert jnp.allclose(out, ref, atol=1e-2, rtol=1e-2), "bf16 path mismatch vs reference"

    # Full-precision path (same kernel, f32 weight) for a tight numerical check.
    w_f32, b_pack32, _ = prepare_params(weight, bias, compute_dtype=jnp.float32)
    out32 = jax.block_until_ready(perturbation_embedding(pert, w_f32, b_pack32, e_dim))
    assert out32.shape == (batch, emb_dim)
    assert jnp.allclose(out32, ref, atol=1e-5, rtol=1e-5), "f32 path mismatch vs reference"

    print("KERNEL_OK")
</pallas_src>

<mosaic_0001>
module attributes {stable_mosaic.version = 11 : i64} {
  func.func @linear_kernel(%arg0: i32, %arg1: memref<8x32xf32, #tpu.memory_space<vmem>>, %arg2: memref<32x128xbf16, #tpu.memory_space<vmem>>, %arg3: memref<1x128xf32, #tpu.memory_space<vmem>>, %arg4: memref<8x128xf32, #tpu.memory_space<vmem>>) attributes {dimension_semantics = [#tpu.dimension_semantics<parallel>], iteration_bounds = array<i64: 1>, scalar_prefetch = 0 : i64, scratch_operands = 0 : i64, tpu.core_type = #tpu.core_type<tc>, window_params = [{transform_indices = @transform_0, window_bounds = array<i64: 8, 32>}, {pipeline_mode = #tpu.pipeline_mode<synchronous>, transform_indices = @transform_1, window_bounds = array<i64: 32, 128>}, {pipeline_mode = #tpu.pipeline_mode<synchronous>, transform_indices = @transform_2, window_bounds = array<i64: 1, 128>}, {transform_indices = @transform_3, window_bounds = array<i64: 8, 128>}]} {
    %c0 = arith.constant 0 : index
    %c0_0 = arith.constant 0 : index
    %0 = vector.load %arg1[%c0, %c0_0] : memref<8x32xf32, #tpu.memory_space<vmem>>, vector<8x32xf32>
    %1 = arith.truncf %0 : vector<8x32xf32> to vector<8x32xbf16>
    %c0_1 = arith.constant 0 : index
    %c0_2 = arith.constant 0 : index
    %2 = vector.load %arg2[%c0_1, %c0_2] : memref<32x128xbf16, #tpu.memory_space<vmem>>, vector<32x128xbf16>
    %cst = arith.constant dense<0.000000e+00> : vector<8x128xf32>
    %3 = tpu.matmul %1, %2, %cst {dimension_numbers = #tpu.dot_dimension_numbers<[1], [0], [0], [1], [0, 0, 1, 1], [], []>} : vector<8x32xbf16>, vector<32x128xbf16>, vector<8x128xf32> -> vector<8x128xf32>
    %c0_3 = arith.constant 0 : index
    %c0_4 = arith.constant 0 : index
    %4 = vector.load %arg3[%c0_3, %c0_4] : memref<1x128xf32, #tpu.memory_space<vmem>>, vector<1x128xf32>
    %5 = vector.broadcast %4 : vector<1x128xf32> to vector<8x128xf32>
    %6 = arith.addf %3, %5 : vector<8x128xf32>
    %c0_5 = arith.constant 0 : index
    %c0_6 = arith.constant 0 : index
    %7 = vector.load %arg4[%c0_5, %c0_6] : memref<8x128xf32, #tpu.memory_space<vmem>>, vector<8x128xf32>
    tpu.vector_store %arg4[%c0_5, %c0_6], %6 {strides = array<i32>} : memref<8x128xf32, #tpu.memory_space<vmem>>, vector<8x128xf32>,
    return
  }
  func.func @transform_0(%arg0: i32) -> (i32, i32) {
    %c0_i32 = arith.constant 0 : i32
    %c0_i32_0 = arith.constant 0 : i32
    return %arg0, %c0_i32 : i32, i32
  }
  func.func @transform_1(%arg0: i32) -> (i32, i32) {
    %c0_i32 = arith.constant 0 : i32
    %c0_i32_0 = arith.constant 0 : i32
    %c0_i32_1 = arith.constant 0 : i32
    return %c0_i32, %c0_i32_0 : i32, i32
  }
  func.func @transform_2(%arg0: i32) -> (i32, i32) {
    %c0_i32 = arith.constant 0 : i32
    %c0_i32_0 = arith.constant 0 : i32
    %c0_i32_1 = arith.constant 0 : i32
    return %c0_i32, %c0_i32_0 : i32, i32
  }
  func.func @transform_3(%arg0: i32) -> (i32, i32) {
    %c0_i32 = arith.constant 0 : i32
    %c0_i32_0 = arith.constant 0 : i32
    return %arg0, %c0_i32 : i32, i32
  }
}

</mosaic_0001>

<bundles_post_ra>
// kernel: tpu_custom_call.1
= control target key start
LH: loop header
LB: loop body
LE: loop exit
PB: predicated region body
PF: predicated region fallthrough
CT: control target
= control target key end

     0   :  { %8 = vsyncpa [#allocation3], 0  ;;  %s297_s0 = inlined_call_operand.hbm [shape: f32[8,32], index: 0, kind: input, shape index: {}]   ;;  %s298_s1 = inlined_call_operand.hbm [shape: bf16[32,128], index: 1, kind: input, shape index: {}]   ;;  %s299_s2 = inlined_call_operand.vmem [shape: f32[1,128], index: 2, kind: input, shape index: {}]   ;;  %s300_s3 = inlined_call_operand.hbm [shape: f32[8,128], index: 3, kind: output, shape index: {}]  }
   0x1   :  { %9 = vsyncpa [#allocation6], 0 }
   0x2   :  { %10 = vsyncpa [#allocation4], 0  ;;  %s224_s12 = smov [#allocation2]   ;;  %s225_s14 = smov [#allocation5]  }
   0x3   :  { %s17_s13 = sshll.u32 %s224_s12, 4  ;;  %s26_s15 = sshll.u32 %s225_s14, 4  ;;  %s18_s13 = int_to_ptr.vmem [resolvable:$true] %s17_s13  ;;  %s251_s15 = int_to_ptr.vmem [resolvable:$true] %s26_s15 }
   0x4   :  { %s152_s18 = scalar_lea.hbm %s297_s0, 128 }
   0x5   :  { %p153_p0 = scmp.ne.s32.totalorder %s297_s0, %s152_s18  ;;  %p156_p1 = scmp.lt.u32.totalorder %s152_s18, %s297_s0 }
   0x7   :  { %p158_p2 = pnand %p156_p1, %p153_p0 }
   0x9   :  { %161 = shalt.err (!%p158_p2)
}
   0xa   :  { %s162_s23 = scalar_lea.vmem %s18_s13, 128  ;;  %p167_p4 = scmp.lt.s32.totalorder %s18_s13, %s18_s13 }
   0xb   :  { %p163_p3 = scmp.ne.s32.totalorder %s18_s13, %s162_s23  ;;  %p168_p5 = scmp.lt.s32.totalorder %s162_s23, %s162_s23 }
   0xd   :  { %p169_p6 = por %p168_p5, %p167_p4 }
   0xf   :  { %p170_p7 = pnand %p169_p6, %p163_p3 }
  0x11   :  { %173 = shalt.err (!%p170_p7)
}
  0x12   :  { %20 = dma.hbm_to_vmem [thread:$0]  %s297_s0, 128, %s18_s13, [#allocation3]  }
  0x13   :  { %s174_s28 = scalar_lea.hbm %s298_s1, 256 }
  0x14   :  { %p175_p8 = scmp.ne.s32.totalorder %s298_s1, %s174_s28  ;;  %p178_p9 = scmp.lt.u32.totalorder %s174_s28, %s298_s1 }
  0x16   :  { %p180_p10 = pnand %p178_p9, %p175_p8 }
  0x18   :  { %183 = shalt.err (!%p180_p10)
}
  0x19   :  { %s184_s6 = scalar_lea.vmem %s251_s15, 256  ;;  %p189_p12 = scmp.lt.s32.totalorder %s251_s15, %s251_s15 }
  0x1a   :  { %p185_p11 = scmp.ne.s32.totalorder %s251_s15, %s184_s6  ;;  %p190_p13 = scmp.lt.s32.totalorder %s184_s6, %s184_s6 }
  0x1c   :  { %p191_p0 = por %p190_p13, %p189_p12 }
  0x1e   :  { %p192_p1 = pnand %p191_p0, %p185_p11 }
  0x20   :  { %195 = shalt.err (!%p192_p1)
}
  0x21   :  { %s226_s0 = smov 64   ;;  %s227_s7 = smov 4  }
  0x22   :  { %32 = dma.hbm_to_vmem [thread:$0]  %s298_s1, 256, %s251_s15, [#allocation6], %s226_s0, %s226_s0, %s227_s7  }
  0x23   :  { %218 = dma.done.wait [#allocation3], 128  }
  0x24   :  { %219 = vsyncadd [#allocation3], 4294967168 }
  0x25   :  { %220 = dma.done.wait [#allocation6], 256  }
  0x26   :  { %221 = vsyncadd [#allocation6], 4294967040  ;;  %v228_v0 = vmov 0.0   ;;  %vm229_vm0 = vmmov 0   ;;  %v150_v1 = vld [vmem:[#allocation5] sm:$0xff]   ;;  %v151_v2 = vld [vmem:[#allocation5 + $0x8] sm:$0xff]  }
  0x27   :  { %135 = vmatprep.subr.bf16.mxu0 %v228_v0  ;;  %139 = vmatprep.mubr.msk.bf16.mxu0 %vm229_vm0, %v228_v0  ;;  %v42_v3 = vld [vmem:[#allocation2] sm:$0xff]  ;;  %vm67_vm1 = vcmask 261120   ;;  %s230_s1 = smov [#allocation7]  }
  0x28   :  { %136 = vmatpush3.bf16.msra.mxu0 %v150_v1  ;;  %v43_v4 = vpack.c.bf16 %v42_v3, %v42_v3  ;;  %v128_v5 = vld [vmem:[%s299_s2] ss:$0 sm:$0xff]  ;;  %s118_s12 = sshll.u32 %s230_s1, 4  ;;  %s119_s12 = int_to_ptr.vmem [resolvable:$true] %s118_s12 }
  0x29   :  { %137 = vmatprep.subr.bf16.mxu0 %v228_v0  ;;  %s196_s13 = scalar_lea.vmem %s119_s12, 128  ;;  %p201_p3 = scmp.lt.s32.totalorder %s119_s12, %s119_s12 }
  0x2a   :  { %p197_p2 = scmp.ne.s32.totalorder %s119_s12, %s196_s13  ;;  %p202_p4 = scmp.lt.s32.totalorder %s196_s13, %s196_s13 }
  0x2c   :  { %138 = vmatpush3.bf16.msra.mxu0 %v151_v2  ;;  %p203_p5 = por %p202_p4, %p201_p3 }
  0x2e   :  { %p204_p6 = pnand %p203_p5, %p197_p2 }
  0x2f   :  { %140 = vmatmul.mubr.msk.bf16.vlgmr.msra.gmra.mrb[0].mxu0 %vm67_vm1, %v43_v4 }
 0x102   :  { %v105_v6 = vpop.f32.mrb[0].mxu0 }
 0x103   :  { %v106_v7 = vadd.f32 %v128_v5, %v105_v6  ;;  %v141_v8 = vpop.f32.mrb[1].mxu0 }
 0x104   :  { %v108_v9 = vpop.f32.mrb[2].mxu0 }
 0x105   :  { %111 = vst [vmem:[#allocation7] sm:$0xff] %v106_v7  ;;  %v142_v10 = vpop.f32.mrb[3].mxu0 }
 0x106   :  { %207 = shalt.err (!%p204_p6)
}
 0x107   :  { %s208_s2 = scalar_lea.hbm %s300_s3, 128 }
 0x108   :  { %p209_p7 = scmp.ne.s32.totalorder %s300_s3, %s208_s2  ;;  %p212_p8 = scmp.lt.u32.totalorder %s208_s2, %s300_s3 }
 0x10a   :  { %p214_p9 = pnand %p212_p8, %p209_p7 }
 0x10c   :  { %217 = shalt.err (!%p214_p9)
}
 0x10d   :  { %121 = dma.vmem_to_hbm [thread:$0]  %s119_s12, 128, %s300_s3, [#allocation4]  }
 0x10e   :  { %222 = dma.done.wait [#allocation4], 128  }
 0x10f   :  { %223 = vsyncadd [#allocation4], 4294967168 }
 0x110   :  { %125 = vsyncpa [#allocation3], 1 }
 0x111   :  { %126 = vsyncpa [#allocation6], 1 }
 0x112   :  { %127 = vsyncpa [#allocation4], 1 }

</bundles_post_ra>
